<compile_context>
chip_gen: v6e
topology: v6e:2x2x1
jax: 0.10.0
libtpu: 0.0.40
codegen_flags: <defaults>
</compile_context>

<pallas_src>
from functools import partial

import jax
import jax.numpy as jnp
from jax.experimental import pallas as pl
from jax.experimental.pallas import tpu as pltpu


_LANES = 128      # token tiles are (rows, 128): tokens dense on (sublane, lane)
_ROW_QUANT = 32   # row quantum so int8 mask blocks keep native (32, 128) tiling


def _argmax_mask_kernel(logits_ref, mask_ref, out_ref):
    """Running argmax over the class (leading) axis + masked fill with 0.

    logits_ref : (C, TR, 128) float  -- class-major, tokens dense on (sublane, lane)
    mask_ref   : (TR, 128)    int8
    out_ref    : (TR, 128)    int32
    """
    num_classes = logits_ref.shape[0]
    best_val = logits_ref[0]                                   # (TR, 128)
    best_idx = jnp.zeros(best_val.shape, dtype=jnp.int32)
    # Static unrolled loop over the (small) class axis: ~3 VPU ops per class
    # per 1024 tokens.  Strict ">" keeps the FIRST occurrence on ties,
    # matching torch.argmax / jnp.argmax tie-breaking.
    for c in range(1, num_classes):
        v = logits_ref[c]
        better = v > best_val
        best_val = jnp.where(better, v, best_val)
        best_idx = jnp.where(better, jnp.int32(c), best_idx)
    # masked_fill(~attention_mask.bool(), 0)
    out_ref[...] = jnp.where(mask_ref[...] != 0, best_idx, 0).astype(out_ref.dtype)


@partial(jax.jit, static_argnames=("tile_tokens",))
def softmax_crf_preds(logits, attention_mask, *, tile_tokens=32768):
    """preds = argmax(logits, -1), set to 0 where attention_mask == 0.

    logits:         [B, S, C] float   (C = number of BIO labels, small)
    attention_mask: [B, S]    int / bool
    returns:        [B, S]    int32
    """
    B, S, C = logits.shape
    N = B * S

    # ---- tiling over flattened tokens ---------------------------------------
    n_rows_min = pl.cdiv(N, _LANES)
    if n_rows_min * _LANES <= tile_tokens:
        # Single block covering everything (block == full array: always legal).
        tile_rows = n_rows_min
    else:
        tile_rows = max(_ROW_QUANT,
                        (tile_tokens // _LANES) // _ROW_QUANT * _ROW_QUANT)
    n_rows = pl.cdiv(n_rows_min, tile_rows) * tile_rows
    n_pad = n_rows * _LANES
    grid = (n_rows // tile_rows,)

    # ---- layout plumbing (pad + class-major transpose fuse into one XLA copy)
    lg = logits.reshape(N, C)
    if n_pad != N:
        lg = jnp.pad(lg, ((0, n_pad - N), (0, 0)))
    lg = jnp.transpose(lg, (1, 0)).reshape(C, n_rows, _LANES)   # class-major

    mask = attention_mask.reshape(N) != 0
    if n_pad != N:
        mask = jnp.pad(mask, (0, n_pad - N))                    # padded -> 0
    mask = mask.reshape(n_rows, _LANES).astype(jnp.int8)

    out = pl.pallas_call(
        _argmax_mask_kernel,
        out_shape=jax.ShapeDtypeStruct((n_rows, _LANES), jnp.int32),
        grid_spec=pltpu.PrefetchScalarGridSpec(
            num_scalar_prefetch=0,
            grid=grid,
            in_specs=[
                pl.BlockSpec((C, tile_rows, _LANES), lambda i: (0, i, 0)),
                pl.BlockSpec((tile_rows, _LANES), lambda i: (i, 0)),
            ],
            out_specs=pl.BlockSpec((tile_rows, _LANES), lambda i: (i, 0)),
        ),
        compiler_params=pltpu.CompilerParams(
            dimension_semantics=("parallel",),   # megacore sharding on v7x
        ),
    )(lg, mask)

    return out.reshape(n_pad)[:N].reshape(B, S)


# ---------------- host-side glue (pure Python, mirrors the PyTorch module) ----
def get_entities_bio(labels):
    """Minimal BIO span decoder: returns list of (type, start, end)."""
    spans, start, etype = [], None, None
    for i, lab in enumerate(list(labels) + ["O"]):
        if lab.startswith("B-"):
            if start is not None:
                spans.append((etype, start, i - 1))
            start, etype = i, lab[2:]
        elif lab.startswith("I-") and start is not None and lab[2:] == etype:
            continue
        else:
            if start is not None:
                spans.append((etype, start, i - 1))
            start, etype = None, None
    return spans


class SoftmaxCrfPostProcessJAX:
    """method == 'softmax' path of SoftmaxCrfPostProcess."""
    # TODO(synk): the non-softmax branch (outputs[0].squeeze(0).tolist()) is a
    # host-side passthrough with no tensor compute; not implemented here.

    def __init__(self, id2label, entity_label2id):
        self.id2label = {int(k): v for k, v in id2label.items()}
        self.entity_label2id = entity_label2id

    def _decode(self, index_rows):
        results = []
        for row in index_rows:
            text = [self.id2label[i] for i in row]
            ents = get_entities_bio(text)
            results.append([(self.entity_label2id[t[0]], t[1], t[2]) for t in ents])
        return results

    def __call__(self, outputs, attention_mask, labels=None):
        preds = jax.device_get(softmax_crf_preds(outputs[0], attention_mask)).tolist()
        results = self._decode(preds)
        if labels is not None:
            new_labels = self._decode(jax.device_get(labels).tolist())
            return results, new_labels
        return results


if __name__ == "__main__":
    key = jax.random.PRNGKey(0)
    k1, k2 = jax.random.split(key)
    C = 9  # number of BIO labels

    # ---- shape 1: exercises the multi-tile grid + ragged padding path --------
    B, S = 4, 4000
    logits = jax.random.normal(k1, (B, S, C), dtype=jnp.float32)
    lengths = jnp.array([4000, 3500, 1024, 7], dtype=jnp.int32)
    attention_mask = (jnp.arange(S, dtype=jnp.int32)[None, :] < lengths[:, None]).astype(jnp.int32)

    out = jax.block_until_ready(softmax_crf_preds(logits, attention_mask, tile_tokens=4096))
    ref = jnp.where(attention_mask != 0, jnp.argmax(logits, axis=-1), 0).astype(jnp.int32)
    assert (jax.device_get(out) == jax.device_get(ref)).all(), "mismatch vs reference (tiled)"

    # ---- shape 2: tiny module-like input, single-block path ------------------
    Bs, Ss = 2, 16
    logits_s = jax.random.normal(k2, (Bs, Ss, C), dtype=jnp.float32)
    mask_s = jnp.concatenate(
        [jnp.ones((Bs, Ss - 4), jnp.int32), jnp.zeros((Bs, 4), jnp.int32)], axis=1)
    out_s = jax.block_until_ready(softmax_crf_preds(logits_s, mask_s))
    ref_s = jnp.where(mask_s != 0, jnp.argmax(logits_s, axis=-1), 0).astype(jnp.int32)
    assert (jax.device_get(out_s) == jax.device_get(ref_s)).all(), "mismatch vs reference (small)"

    # ---- host-side post-process glue (mirrors the PyTorch forward) -----------
    id2label = {0: "O", 1: "B-PER", 2: "I-PER", 3: "B-LOC", 4: "I-LOC",
                5: "B-ORG", 6: "I-ORG", 7: "B-MISC", 8: "I-MISC"}
    entity_label2id = {"PER": 0, "LOC": 1, "ORG": 2, "MISC": 3}
    post = SoftmaxCrfPostProcessJAX(id2label, entity_label2id)
    results = post((logits_s,), attention_mask=mask_s)
    assert len(results) == Bs

    print("KERNEL_OK")
</pallas_src>

<mosaic_0001>
module attributes {stable_mosaic.version = 11 : i64} {
  func.func @_argmax_mask_kernel(%arg0: i32, %arg1: memref<9x32x128xf32, #tpu.memory_space<vmem>>, %arg2: memref<32x128xi8, #tpu.memory_space<vmem>>, %arg3: memref<32x128xi32, #tpu.memory_space<vmem>>) attributes {dimension_semantics = [#tpu.dimension_semantics<parallel>], iteration_bounds = array<i64: 4>, scalar_prefetch = 0 : i64, scratch_operands = 0 : i64, tpu.core_type = #tpu.core_type<tc>, window_params = [{transform_indices = @transform_0, window_bounds = array<i64: 9, 32, 128>}, {transform_indices = @transform_1, window_bounds = array<i64: 32, 128>}, {transform_indices = @transform_2, window_bounds = array<i64: 32, 128>}]} {
    %c0 = arith.constant 0 : index
    %c0_0 = arith.constant 0 : index
    %c0_1 = arith.constant 0 : index
    %0 = vector.load %arg1[%c0, %c0_0, %c0_1] : memref<9x32x128xf32, #tpu.memory_space<vmem>>, vector<1x32x128xf32>
    %1 = vector.shape_cast %0 : vector<1x32x128xf32> to vector<32x128xf32>
    %c0_i32 = arith.constant 0 : i32
    %2 = vector.broadcast %c0_i32 : i32 to vector<32x128xi32>
    %c1 = arith.constant 1 : index
    %c0_2 = arith.constant 0 : index
    %c0_3 = arith.constant 0 : index
    %3 = vector.load %arg1[%c1, %c0_2, %c0_3] : memref<9x32x128xf32, #tpu.memory_space<vmem>>, vector<1x32x128xf32>
    %4 = vector.shape_cast %3 : vector<1x32x128xf32> to vector<32x128xf32>
    %5 = arith.cmpf ogt, %4, %1 : vector<32x128xf32>
    %6 = arith.select %5, %4, %1 : vector<32x128xi1>, vector<32x128xf32>
    %c1_i32 = arith.constant 1 : i32
    %7 = vector.broadcast %c1_i32 : i32 to vector<32x128xi32>
    %8 = arith.select %5, %7, %2 : vector<32x128xi1>, vector<32x128xi32>
    %c2 = arith.constant 2 : index
    %c0_4 = arith.constant 0 : index
    %c0_5 = arith.constant 0 : index
    %9 = vector.load %arg1[%c2, %c0_4, %c0_5] : memref<9x32x128xf32, #tpu.memory_space<vmem>>, vector<1x32x128xf32>
    %10 = vector.shape_cast %9 : vector<1x32x128xf32> to vector<32x128xf32>
    %11 = arith.cmpf ogt, %10, %6 : vector<32x128xf32>
    %12 = arith.select %11, %10, %6 : vector<32x128xi1>, vector<32x128xf32>
    %c2_i32 = arith.constant 2 : i32
    %13 = vector.broadcast %c2_i32 : i32 to vector<32x128xi32>
    %14 = arith.select %11, %13, %8 : vector<32x128xi1>, vector<32x128xi32>
    %c3 = arith.constant 3 : index
    %c0_6 = arith.constant 0 : index
    %c0_7 = arith.constant 0 : index
    %15 = vector.load %arg1[%c3, %c0_6, %c0_7] : memref<9x32x128xf32, #tpu.memory_space<vmem>>, vector<1x32x128xf32>
    %16 = vector.shape_cast %15 : vector<1x32x128xf32> to vector<32x128xf32>
    %17 = arith.cmpf ogt, %16, %12 : vector<32x128xf32>
    %18 = arith.select %17, %16, %12 : vector<32x128xi1>, vector<32x128xf32>
    %c3_i32 = arith.constant 3 : i32
    %19 = vector.broadcast %c3_i32 : i32 to vector<32x128xi32>
    %20 = arith.select %17, %19, %14 : vector<32x128xi1>, vector<32x128xi32>
    %c4 = arith.constant 4 : index
    %c0_8 = arith.constant 0 : index
    %c0_9 = arith.constant 0 : index
    %21 = vector.load %arg1[%c4, %c0_8, %c0_9] : memref<9x32x128xf32, #tpu.memory_space<vmem>>, vector<1x32x128xf32>
    %22 = vector.shape_cast %21 : vector<1x32x128xf32> to vector<32x128xf32>
    %23 = arith.cmpf ogt, %22, %18 : vector<32x128xf32>
    %24 = arith.select %23, %22, %18 : vector<32x128xi1>, vector<32x128xf32>
    %c4_i32 = arith.constant 4 : i32
    %25 = vector.broadcast %c4_i32 : i32 to vector<32x128xi32>
    %26 = arith.select %23, %25, %20 : vector<32x128xi1>, vector<32x128xi32>
    %c5 = arith.constant 5 : index
    %c0_10 = arith.constant 0 : index
    %c0_11 = arith.constant 0 : index
    %27 = vector.load %arg1[%c5, %c0_10, %c0_11] : memref<9x32x128xf32, #tpu.memory_space<vmem>>, vector<1x32x128xf32>
    %28 = vector.shape_cast %27 : vector<1x32x128xf32> to vector<32x128xf32>
    %29 = arith.cmpf ogt, %28, %24 : vector<32x128xf32>
    %30 = arith.select %29, %28, %24 : vector<32x128xi1>, vector<32x128xf32>
    %c5_i32 = arith.constant 5 : i32
    %31 = vector.broadcast %c5_i32 : i32 to vector<32x128xi32>
    %32 = arith.select %29, %31, %26 : vector<32x128xi1>, vector<32x128xi32>
    %c6 = arith.constant 6 : index
    %c0_12 = arith.constant 0 : index
    %c0_13 = arith.constant 0 : index
    %33 = vector.load %arg1[%c6, %c0_12, %c0_13] : memref<9x32x128xf32, #tpu.memory_space<vmem>>, vector<1x32x128xf32>
    %34 = vector.shape_cast %33 : vector<1x32x128xf32> to vector<32x128xf32>
    %35 = arith.cmpf ogt, %34, %30 : vector<32x128xf32>
    %36 = arith.select %35, %34, %30 : vector<32x128xi1>, vector<32x128xf32>
    %c6_i32 = arith.constant 6 : i32
    %37 = vector.broadcast %c6_i32 : i32 to vector<32x128xi32>
    %38 = arith.select %35, %37, %32 : vector<32x128xi1>, vector<32x128xi32>
    %c7 = arith.constant 7 : index
    %c0_14 = arith.constant 0 : index
    %c0_15 = arith.constant 0 : index
    %39 = vector.load %arg1[%c7, %c0_14, %c0_15] : memref<9x32x128xf32, #tpu.memory_space<vmem>>, vector<1x32x128xf32>
    %40 = vector.shape_cast %39 : vector<1x32x128xf32> to vector<32x128xf32>
    %41 = arith.cmpf ogt, %40, %36 : vector<32x128xf32>
    %42 = arith.select %41, %40, %36 : vector<32x128xi1>, vector<32x128xf32>
    %c7_i32 = arith.constant 7 : i32
    %43 = vector.broadcast %c7_i32 : i32 to vector<32x128xi32>
    %44 = arith.select %41, %43, %38 : vector<32x128xi1>, vector<32x128xi32>
    %c8 = arith.constant 8 : index
    %c0_16 = arith.constant 0 : index
    %c0_17 = arith.constant 0 : index
    %45 = vector.load %arg1[%c8, %c0_16, %c0_17] : memref<9x32x128xf32, #tpu.memory_space<vmem>>, vector<1x32x128xf32>
    %46 = vector.shape_cast %45 : vector<1x32x128xf32> to vector<32x128xf32>
    %47 = arith.cmpf ogt, %46, %42 : vector<32x128xf32>
    %c8_i32 = arith.constant 8 : i32
    %48 = vector.broadcast %c8_i32 : i32 to vector<32x128xi32>
    %49 = arith.select %47, %48, %44 : vector<32x128xi1>, vector<32x128xi32>
    %c0_18 = arith.constant 0 : index
    %c0_19 = arith.constant 0 : index
    %50 = vector.load %arg2[%c0_18, %c0_19] : memref<32x128xi8, #tpu.memory_space<vmem>>, vector<32x128xi8>
    %c0_i8 = arith.constant 0 : i8
    %51 = vector.broadcast %c0_i8 : i8 to vector<32x128xi8>
    %52 = arith.cmpi ne, %50, %51 : vector<32x128xi8>
    %c0_i32_20 = arith.constant 0 : i32
    %53 = vector.broadcast %c0_i32_20 : i32 to vector<32x128xi32>
    %54 = arith.select %52, %49, %53 : vector<32x128xi1>, vector<32x128xi32>
    %c0_21 = arith.constant 0 : index
    %c0_22 = arith.constant 0 : index
    %55 = vector.load %arg3[%c0_21, %c0_22] : memref<32x128xi32, #tpu.memory_space<vmem>>, vector<32x128xi32>
    tpu.vector_store %arg3[%c0_21, %c0_22], %54 {strides = array<i32>} : memref<32x128xi32, #tpu.memory_space<vmem>>, vector<32x128xi32>,
    return
  }
  func.func @transform_0(%arg0: i32) -> (i32, i32, i32) {
    %c0_i32 = arith.constant 0 : i32
    %c0_i32_0 = arith.constant 0 : i32
    %c0_i32_1 = arith.constant 0 : i32
    return %c0_i32, %arg0, %c0_i32_0 : i32, i32, i32
  }
  func.func @transform_1(%arg0: i32) -> (i32, i32) {
    %c0_i32 = arith.constant 0 : i32
    %c0_i32_0 = arith.constant 0 : i32
    return %arg0, %c0_i32 : i32, i32
  }
  func.func @transform_2(%arg0: i32) -> (i32, i32) {
    %c0_i32 = arith.constant 0 : i32
    %c0_i32_0 = arith.constant 0 : i32
    return %arg0, %c0_i32 : i32, i32
  }
}

</mosaic_0001>

<bundles_post_ra>
// kernel: softmax_crf_preds.1
= control target key start
LH: loop header
LB: loop body
LE: loop exit
PB: predicated region body
PF: predicated region fallthrough
CT: control target
= control target key end

     0   :  { %s702_s9 = smov 0   ;;  %s704_s10 = smov 0   ;;  %s916_s0 = inlined_call_operand.vmem [shape: f32[9,128,128], index: 0, kind: input, shape index: {}]   ;;  %s917_s1 = inlined_call_operand.vmem [shape: s8[128,128], index: 1, kind: input, shape index: {}]   ;;  %s918_s2 = inlined_call_operand.vmem [shape: s32[128,128], index: 2, kind: output, shape index: {}]  }
   0x1   :  { %s706_s11 = smov 0  }
   0x2 LB: > { %s718_s12 = sadd.s32 4294967295, %s684_s11   ;;  %s721_s13 = sadd.s32 1, %s684_s11   ;;  %s684_s11 = sphi %s706_s11, %s924_s11   ;;  %s680_s10 = sphi %s704_s10, %s923_s10   ;;  %s676_s9 = sphi %s702_s9, %s922_s9  }
   0x3   : > { %s16_s14 = ssub.s32 %s684_s11, %s721_s13  ;;  %s19_s15 = sadd.s32 1, %s680_s10 }
   0x4   : > { %p17_p0 = scmp.eq.s32.totalorder %s16_s14, 0  ;;  %p26_p1 = scmp.ne.s32.totalorder %s680_s10, %s676_s9 }
   0x5   : > { %p27_p2 = scmp.eq.s32.totalorder %s684_s11, 0  ;;  %p593_p4 = scmp.ge.s32.totalorder %s684_s11, 4 }
   0x6   : > { %s730_s16 = scalar_select %p17_p0, %s680_s10, %s19_s15  }
   0x7   : > { %p28_p3 = por %p27_p2, %p26_p1  ;;  %104 = sbr.rel (%p593_p4) target bundleno = 35 (0x23), region = 16 }
   0xc   : > { %107 = sbr.rel (!%p28_p3) target bundleno = 35 (0x23), region = 20  ;;  %s109_s17 = sand.u32 (%p28_p3), 1, %s680_s10  }
   0xd   : > { %s634_s18 = sshll.u32 (%p28_p3), %s684_s11, 5  ;;  %s635_s19 = smul.u32 (%p28_p3), 288, %s109_s17 }
   0xe   : > { %s738_s22 = scalar_lea.vmem (%p28_p3), %s916_s0, %s634_s18 }
   0xf   : > { %v213_v0 = vld [vmem:[%s738_s22] sm:$0xff] (%p28_p3)  ;;  %v215_v1 = vld [vmem:[%s738_s22 + $0x8] sm:$0xff] (%p28_p3)  ;;  %v217_v2 = vld [vmem:[%s738_s22 + $0x10] sm:$0xff] (%p28_p3)  ;;  %s746_s23 = scalar_lea.vmem (%p28_p3), [#allocation2], %s635_s19 }
  0x10   : > { %v219_v3 = vld [vmem:[%s738_s22 + $0x18] sm:$0xff] (%p28_p3)  ;;  %v221_v4 = vld [vmem:[%s738_s22 + $0x80] sm:$0xff] (%p28_p3)  ;;  %v223_v5 = vld [vmem:[%s738_s22 + $0x88] sm:$0xff] (%p28_p3)  ;;  %214 = vst [vmem:[%s746_s23] sm:$0xff] (%p28_p3), %v213_v0 }
  0x11   : > { %216 = vst [vmem:[%s746_s23 + $0x8] sm:$0xff] %v215_v1  ;;  %218 = vst [vmem:[%s746_s23 + $0x10] sm:$0xff] %v217_v2  ;;  %v225_v6 = vld [vmem:[%s738_s22 + $0x90] sm:$0xff]  ;;  %v227_v7 = vld [vmem:[%s738_s22 + $0x98] sm:$0xff] }
  0x12   : > { %220 = vst [vmem:[%s746_s23 + $0x18] sm:$0xff] %v219_v3  ;;  %222 = vst [vmem:[%s746_s23 + $0x20] sm:$0xff] %v221_v4  ;;  %v229_v8 = vld [vmem:[%s738_s22 + $0x100] sm:$0xff]  ;;  %v231_v9 = vld [vmem:[%s738_s22 + $0x108] sm:$0xff] }
  0x13   : > { %224 = vst [vmem:[%s746_s23 + $0x28] sm:$0xff] %v223_v5  ;;  %226 = vst [vmem:[%s746_s23 + $0x30] sm:$0xff] %v225_v6  ;;  %v233_v10 = vld [vmem:[%s738_s22 + $0x110] sm:$0xff]  ;;  %v235_v11 = vld [vmem:[%s738_s22 + $0x118] sm:$0xff] }
  0x14   : > { %228 = vst [vmem:[%s746_s23 + $0x38] sm:$0xff] %v227_v7  ;;  %230 = vst [vmem:[%s746_s23 + $0x40] sm:$0xff] %v229_v8  ;;  %v237_v12 = vld [vmem:[%s738_s22 + $0x180] sm:$0xff]  ;;  %v239_v13 = vld [vmem:[%s738_s22 + $0x188] sm:$0xff] }
  0x15   : > { %232 = vst [vmem:[%s746_s23 + $0x48] sm:$0xff] %v231_v9  ;;  %234 = vst [vmem:[%s746_s23 + $0x50] sm:$0xff] %v233_v10  ;;  %v241_v14 = vld [vmem:[%s738_s22 + $0x190] sm:$0xff]  ;;  %v243_v15 = vld [vmem:[%s738_s22 + $0x198] sm:$0xff] }
  0x16   : > { %236 = vst [vmem:[%s746_s23 + $0x58] sm:$0xff] %v235_v11  ;;  %238 = vst [vmem:[%s746_s23 + $0x60] sm:$0xff] %v237_v12  ;;  %v245_v16 = vld [vmem:[%s738_s22 + $0x200] sm:$0xff]  ;;  %v247_v17 = vld [vmem:[%s738_s22 + $0x208] sm:$0xff] }
  0x17   : > { %240 = vst [vmem:[%s746_s23 + $0x68] sm:$0xff] %v239_v13  ;;  %242 = vst [vmem:[%s746_s23 + $0x70] sm:$0xff] %v241_v14  ;;  %v249_v18 = vld [vmem:[%s738_s22 + $0x210] sm:$0xff]  ;;  %v251_v19 = vld [vmem:[%s738_s22 + $0x218] sm:$0xff] }
  0x18   : > { %244 = vst [vmem:[%s746_s23 + $0x78] sm:$0xff] %v243_v15  ;;  %246 = vst [vmem:[%s746_s23 + $0x80] sm:$0xff] %v245_v16  ;;  %v253_v20 = vld [vmem:[%s738_s22 + $0x280] sm:$0xff]  ;;  %v255_v21 = vld [vmem:[%s738_s22 + $0x288] sm:$0xff] }
  0x19   : > { %248 = vst [vmem:[%s746_s23 + $0x88] sm:$0xff] %v247_v17  ;;  %250 = vst [vmem:[%s746_s23 + $0x90] sm:$0xff] %v249_v18  ;;  %v257_v22 = vld [vmem:[%s738_s22 + $0x290] sm:$0xff]  ;;  %v259_v23 = vld [vmem:[%s738_s22 + $0x298] sm:$0xff] }
  0x1a   : > { %252 = vst [vmem:[%s746_s23 + $0x98] sm:$0xff] %v251_v19  ;;  %254 = vst [vmem:[%s746_s23 + $0xa0] sm:$0xff] %v253_v20  ;;  %v261_v24 = vld [vmem:[%s738_s22 + $0x300] sm:$0xff]  ;;  %v263_v25 = vld [vmem:[%s738_s22 + $0x308] sm:$0xff] }
  0x1b   : > { %256 = vst [vmem:[%s746_s23 + $0xa8] sm:$0xff] %v255_v21  ;;  %258 = vst [vmem:[%s746_s23 + $0xb0] sm:$0xff] %v257_v22  ;;  %v265_v26 = vld [vmem:[%s738_s22 + $0x310] sm:$0xff]  ;;  %v267_v27 = vld [vmem:[%s738_s22 + $0x318] sm:$0xff] }
  0x1c   : > { %260 = vst [vmem:[%s746_s23 + $0xb8] sm:$0xff] %v259_v23  ;;  %262 = vst [vmem:[%s746_s23 + $0xc0] sm:$0xff] %v261_v24  ;;  %v269_v28 = vld [vmem:[%s738_s22 + $0x380] sm:$0xff]  ;;  %v271_v29 = vld [vmem:[%s738_s22 + $0x388] sm:$0xff] }
  0x1d   : > { %264 = vst [vmem:[%s746_s23 + $0xc8] sm:$0xff] %v263_v25  ;;  %266 = vst [vmem:[%s746_s23 + $0xd0] sm:$0xff] %v265_v26  ;;  %v273_v30 = vld [vmem:[%s738_s22 + $0x390] sm:$0xff]  ;;  %v275_v31 = vld [vmem:[%s738_s22 + $0x398] sm:$0xff] }
  0x1e   : > { %268 = vst [vmem:[%s746_s23 + $0xd8] sm:$0xff] %v267_v27  ;;  %270 = vst [vmem:[%s746_s23 + $0xe0] sm:$0xff] %v269_v28  ;;  %v277_v32 = vld [vmem:[%s738_s22 + $0x400] sm:$0xff]  ;;  %v279_v33 = vld [vmem:[%s738_s22 + $0x408] sm:$0xff] }
  0x1f   : > { %272 = vst [vmem:[%s746_s23 + $0xe8] sm:$0xff] %v271_v29  ;;  %274 = vst [vmem:[%s746_s23 + $0xf0] sm:$0xff] %v273_v30  ;;  %v281_v34 = vld [vmem:[%s738_s22 + $0x410] sm:$0xff]  ;;  %v283_v35 = vld [vmem:[%s738_s22 + $0x418] sm:$0xff] }
  0x20   : > { %276 = vst [vmem:[%s746_s23 + $0xf8] sm:$0xff] %v275_v31  ;;  %278 = vst [vmem:[%s746_s23 + $0x100] sm:$0xff] %v277_v32 }
  0x21   : > { %280 = vst [vmem:[%s746_s23 + $0x108] sm:$0xff] %v279_v33  ;;  %282 = vst [vmem:[%s746_s23 + $0x110] sm:$0xff] %v281_v34 }
  0x22   : > { %284 = vst [vmem:[%s746_s23 + $0x118] sm:$0xff] %v283_v35 }
  0x23 PF: > { %p596_p5 = scmp.ge.s32.totalorder %s684_s11, 1  ;;  %p296_p6 = scmp.lt.s32.totalorder %s684_s11, 5 }
  0x25   : > { %p297_p7 = pnand %p596_p5, %p296_p6 }
  0x26   : > { %s303_s24 = sand.u32 (!%p297_p7), 1, %s676_s9   ;;  %p329_p8 = scmp.lt.s32.totalorder (!%p297_p7), %s718_s12, 3 }
  0x27   : > { %300 = sbr.rel (%p297_p7) target bundleno = 82 (0x52), region = 62  ;;  %s598_s4 = sshll.u32 (!%p297_p7), %s718_s12, 2 }
  0x28   : > { %s636_s25 = smul.u32 (!%p297_p7), 288, %s303_s24  ;;  %p834_p9 = scmp.lt.s32.totalorder (!%p297_p7), %s598_s4, 15 }
  0x2a   : > { %s819_s28 = scalar_lea.vmem (!%p297_p7), [#allocation2], %s636_s25 }
  0x2c   : > { %s330_s26 = scalar_select %p329_p8, %s718_s12, 3  ;;  %v341_v36 = vld [vmem:[%s819_s28] sm:$0xff]  ;;  %v686_v40 = vmov 0   ;;  %v342_v44 = vld [vmem:[%s819_s28 + $0x8] sm:$0xff]  ;;  %v343_v25 = vld [vmem:[%s819_s28 + $0x10] sm:$0xff] }
  0x2d   : > { %v600_v37 = vld [vmem:[%s819_s28 + $0x20] sm:$0xff]  ;;  %v601_v45 = vld [vmem:[%s819_s28 + $0x28] sm:$0xff]  ;;  %s926_s4 = smov (!%p834_p9, %s598_s4), 15  ;;  %v602_v28 = vld [vmem:[%s819_s28 + $0x30] sm:$0xff] }
  0x2e   : > { %s597_s27 = sshll.u32 %s330_s26, 3  ;;  %v604_v38 = vld [vmem:[%s819_s28 + $0x40] sm:$0xff]  ;;  %vm350_vm0 = vcmp.gt.f32.partialorder %v600_v37, %v341_v36  ;;  %vm351_vm3 = vcmp.gt.f32.partialorder %v601_v45, %v342_v44  ;;  %v605_v49 = vld [vmem:[%s819_s28 + $0x48] sm:$0xff]  ;;  %s599_s6 = sshll.u32 %s926_s4, 3  ;;  %v344_v29 = vld [vmem:[%s819_s28 + $0x18] sm:$0xff] }
  0x2f   : > { %s332_s3 = scalar_lea.vmem %s917_s1, %s597_s27  ;;  %v354_v39 = vsel %vm350_vm0, %v600_v37, %v341_v36  ;;  %v358_v41 = vsel %vm350_vm0, 1, %v686_v40  ;;  %v608_v42 = vld [vmem:[%s819_s28 + $0x60] sm:$0xff]  ;;  %v355_v51 = vsel %vm351_vm3, %v601_v45, %v342_v44  ;;  %v359_v52 = vsel %vm351_vm3, 1, %v686_v40  ;;  %v609_v53 = vld [vmem:[%s819_s28 + $0x68] sm:$0xff]  ;;  %s868_s9 = scalar_lea.vmem %s918_s2, %s599_s6  ;;  %v603_v30 = vld [vmem:[%s819_s28 + $0x38] sm:$0xff] }
  0x30   : > { %vm367_vm1 = vcmp.gt.f32.partialorder %v604_v38, %v354_v39  ;;  %v477_v43 = vld [vmem:[%s332_s3] sm:$0xff]  ;;  %vm368_vm5 = vcmp.gt.f32.partialorder %v605_v49, %v355_v51  ;;  %v613_v60 = vld [vmem:[%s819_s28 + $0x88] sm:$0xff]  ;;  %v606_v37 = vld [vmem:[%s819_s28 + $0x50] sm:$0xff] }
  0x31   : > { %v371_v46 = vsel %vm367_vm1, %v604_v38, %v354_v39  ;;  %v375_v47 = vsel %vm367_vm1, 2, %v358_v41  ;;  %v612_v48 = vld [vmem:[%s819_s28 + $0x80] sm:$0xff]  ;;  %vm478_vm2 = vnez %v477_v43  ;;  %v372_v58 = vsel %vm368_vm5, %v605_v49, %v355_v51  ;;  %v617_v4 = vld [vmem:[%s819_s28 + $0xa8] sm:$0xff]  ;;  %v607_v39 = vld [vmem:[%s819_s28 + $0x58] sm:$0xff] }
  0x32   : > { %vm384_vm4 = vcmp.gt.f32.partialorder %v608_v42, %v371_v46  ;;  %v841_v50 = vsel %vm478_vm2, 16843009, %v686_v40  ;;  %v616_v56 = vld [vmem:[%s819_s28 + $0xa0] sm:$0xff]  ;;  %v376_v59 = vsel %vm368_vm5, 2, %v359_v52  ;;  %vm385_vm7 = vcmp.gt.f32.partialorder %v609_v53, %v372_v58  ;;  %v621_v12 = vld [vmem:[%s819_s28 + $0xc8] sm:$0xff]  ;;  %v610_v44 = vld [vmem:[%s819_s28 + $0x70] sm:$0xff] }
  0x33   : > { %v388_v54 = vsel %vm384_vm4, %v608_v42, %v371_v46  ;;  %v392_v55 = vsel %vm384_vm4, 3, %v375_v47  ;;  %v480_v57 = vunpack.c.0.s8 %v841_v50  ;;  %v481_v61 = vunpack.c.1.s8 %v841_v50  ;;  %v620_v0 = vld [vmem:[%s819_s28 + $0xc0] sm:$0xff]  ;;  %v625_v20 = vld [vmem:[%s819_s28 + $0xe8] sm:$0xff]  ;;  %v614_v52 = vld [vmem:[%s819_s28 + $0x90] sm:$0xff] }
  0x34   : > { %vm401_vm6 = vcmp.gt.f32.partialorder %v612_v48, %v388_v54  ;;  %v389_v2 = vsel %vm385_vm7, %v609_v53, %v372_v58  ;;  %v393_v3 = vsel %vm385_vm7, 3, %v376_v59  ;;  %v624_v8 = vld [vmem:[%s819_s28 + $0xe0] sm:$0xff]  ;;  %v629_v24 = vld [vmem:[%s819_s28 + $0x108] sm:$0xff]  ;;  %vm352_vm4 = vcmp.gt.f32.partialorder %v602_v28, %v343_v25 }
  0x35   : > { %v405_v62 = vsel %vm401_vm6, %v612_v48, %v388_v54  ;;  %v409_v63 = vsel %vm401_vm6, 4, %v392_v55  ;;  %v484_v1 = vpack.c.b16 %v480_v57, %v480_v57  ;;  %v486_v5 = vpack.c.b16 %v481_v61, %v481_v61  ;;  %v628_v16 = vld [vmem:[%s819_s28 + $0x100] sm:$0xff]  ;;  %v611_v48 = vld [vmem:[%s819_s28 + $0x78] sm:$0xff] }
  0x36   : > { %vm418_vm8 = vcmp.gt.f32.partialorder %v616_v56, %v405_v62  ;;  %vm402_vm9 = vcmp.gt.f32.partialorder %v613_v60, %v389_v2  ;;  %v482_v38 = vunpack.c.2.s8 %v841_v50  ;;  %vm353_vm5 = vcmp.gt.f32.partialorder %v603_v30, %v344_v29  ;;  %v615_v57 = vld [vmem:[%s819_s28 + $0x98] sm:$0xff] }
  0x37   : > { %v422_v6 = vsel %vm418_vm8, %v616_v56, %v405_v62  ;;  %v426_v7 = vsel %vm418_vm8, 5, %v409_v63  ;;  %v485_v9 = vpack.c.b8 %v484_v1, %v484_v1  ;;  %v406_v10 = vsel %vm402_vm9, %v613_v60, %v389_v2  ;;  %v618_v60 = vld [vmem:[%s819_s28 + $0xb0] sm:$0xff] }
  0x38   : > { %vm435_vm10 = vcmp.gt.f32.partialorder %v620_v0, %v422_v6  ;;  %v410_v11 = vsel %vm402_vm9, 4, %v393_v3  ;;  %v487_v13 = vpack.c.b8 %v486_v5, %v486_v5  ;;  %vm419_vm12 = vcmp.gt.f32.partialorder %v617_v4, %v406_v10  ;;  %v622_v3 = vld [vmem:[%s819_s28 + $0xd0] sm:$0xff] }
  0x39   : > { %v439_v14 = vsel %vm435_vm10, %v620_v0, %v422_v6  ;;  %v443_v15 = vsel %vm435_vm10, 6, %v426_v7  ;;  %vm492_vm11 = vnez %v485_v9  ;;  %v423_v18 = vsel %vm419_vm12, %v617_v4, %v406_v10  ;;  %v619_v0 = vld [vmem:[%s819_s28 + $0xb8] sm:$0xff]  ;;  %v626_v10 = vld [vmem:[%s819_s28 + $0xf0] sm:$0xff] }
  0x3a   : > { %vm452_vm13 = vcmp.gt.f32.partialorder %v624_v8, %v439_v14  ;;  %v496_v17 = vsel %vm492_vm11, 16843009, %v686_v40  ;;  %v427_v19 = vsel %vm419_vm12, 5, %v410_v11  ;;  %vm436_vm14 = vcmp.gt.f32.partialorder %v621_v12, %v423_v18 }
  0x3b   : > { %v456_v21 = vsel %vm452_vm13, %v624_v8, %v439_v14  ;;  %v460_v22 = vsel %vm452_vm13, 7, %v443_v15  ;;  %v500_v23 = vunpack.c.0.s8 %v496_v17  ;;  %v440_v26 = vsel %vm436_vm14, %v621_v12, %v423_v18  ;;  %v623_v8 = vld [vmem:[%s819_s28 + $0xd8] sm:$0xff]  ;;  %v630_v17 = vld [vmem:[%s819_s28 + $0x110] sm:$0xff] }
  0x3c   : > { %vm469_vm15 = vcmp.gt.f32.partialorder %v628_v16, %v456_v21  ;;  %v444_v27 = vsel %vm436_vm14, 6, %v427_v19  ;;  %vm493_vm0 = vnez %v487_v13  ;;  %vm453_vm2 = vcmp.gt.f32.partialorder %v625_v20, %v440_v26  ;;  %v627_v14 = vld [vmem:[%s819_s28 + $0xf8] sm:$0xff] }
  0x3d   : > { %v473_v31 = vsel %vm469_vm15, 8, %v460_v22  ;;  %vm504_vm1 = vcmp.ne.s32.totalorder %v500_v23, 0  ;;  %v497_v32 = vsel %vm493_vm0, 16843009, %v686_v40  ;;  %v457_v34 = vsel %vm453_vm2, %v625_v20, %v440_v26  ;;  %v631_v22 = vld [vmem:[%s819_s28 + $0x118] sm:$0xff] }
  0x3e   : > { %v508_v33 = vsel %vm504_vm1, %v473_v31, 0  ;;  %v461_v35 = vsel %vm453_vm2, 7, %v444_v27  ;;  %v501_v36 = vunpack.c.0.s8 %v497_v32  ;;  %vm470_vm3 = vcmp.gt.f32.partialorder %v629_v24, %v457_v34 }
  0x3f   : > { %512 = vst [vmem:[%s868_s9] sm:$0xff] %v508_v33  ;;  %v474_v41 = vsel %vm470_vm3, 8, %v461_v35  ;;  %v356_v42 = vsel %vm352_vm4, %v602_v28, %v343_v25  ;;  %v360_v43 = vsel %vm352_vm4, 1, %v686_v40  ;;  %v488_v46 = vpack.c.b16 %v482_v38, %v482_v38 }
  0x40   : > { %vm505_vm6 = vcmp.ne.s32.totalorder %v501_v36, 0  ;;  %vm369_vm7 = vcmp.gt.f32.partialorder %v606_v37, %v356_v42  ;;  %v357_v47 = vsel %vm353_vm5, %v603_v30, %v344_v29  ;;  %v361_v53 = vsel %vm353_vm5, 1, %v686_v40 }
  0x41   : > { %v509_v45 = vsel %vm505_vm6, %v474_v41, 0  ;;  %v373_v49 = vsel %vm369_vm7, %v606_v37, %v356_v42  ;;  %v377_v51 = vsel %vm369_vm7, 2, %v360_v43  ;;  %vm370_vm8 = vcmp.gt.f32.partialorder %v607_v39, %v357_v47 }
  0x42   : > { %513 = vst [vmem:[%s868_s9 + $0x8] sm:$0xff] %v509_v45  ;;  %vm386_vm9 = vcmp.gt.f32.partialorder %v610_v44, %v373_v49  ;;  %v489_v54 = vpack.c.b8 %v488_v46, %v488_v46  ;;  %v374_v55 = vsel %vm370_vm8, %v607_v39, %v357_v47  ;;  %v378_v56 = vsel %vm370_vm8, 2, %v361_v53 }
  0x43   : > { %v390_v58 = vsel %vm386_vm9, %v610_v44, %v373_v49  ;;  %v394_v59 = vsel %vm386_vm9, 3, %v377_v51  ;;  %vm387_vm10 = vcmp.gt.f32.partialorder %v611_v48, %v374_v55  ;;  %v483_v61 = vunpack.c.3.s8 %v841_v50 }
  0x44   : > { %vm403_vm11 = vcmp.gt.f32.partialorder %v614_v52, %v390_v58  ;;  %vm494_vm12 = vnez %v489_v54  ;;  %v391_v62 = vsel %vm387_vm10, %v611_v48, %v374_v55  ;;  %v395_v63 = vsel %vm387_vm10, 3, %v378_v56 }
  0x45   : > { %v407_v1 = vsel %vm403_vm11, %v614_v52, %v390_v58  ;;  %v411_v2 = vsel %vm403_vm11, 4, %v394_v59  ;;  %v498_v4 = vsel %vm494_vm12, 16843009, %v686_v40  ;;  %vm404_vm13 = vcmp.gt.f32.partialorder %v615_v57, %v391_v62 }
  0x46   : > { %vm420_vm14 = vcmp.gt.f32.partialorder %v618_v60, %v407_v1  ;;  %v502_v5 = vunpack.c.0.s8 %v498_v4  ;;  %v408_v6 = vsel %vm404_vm13, %v615_v57, %v391_v62  ;;  %v412_v7 = vsel %vm404_vm13, 4, %v395_v63 }
  0x47   : > { %v424_v50 = vsel %vm420_vm14, %v618_v60, %v407_v1  ;;  %v428_v9 = vsel %vm420_vm14, 5, %v411_v2  ;;  %vm421_vm15 = vcmp.gt.f32.partialorder %v619_v0, %v408_v6  ;;  %v490_v11 = vpack.c.b16 %v483_v61, %v483_v61 }
  0x48   : > { %vm437_vm0 = vcmp.gt.f32.partialorder %v622_v3, %v424_v50  ;;  %v425_v12 = vsel %vm421_vm15, %v619_v0, %v408_v6  ;;  %v429_v13 = vsel %vm421_vm15, 5, %v412_v7  ;;  %vm896_vm3 = vcmp.ne.s32.totalorder %v502_v5, 0 }
  0x49   : > { %v441_v15 = vsel %vm437_vm0, %v622_v3, %v424_v50  ;;  %v445_v16 = vsel %vm437_vm0, 6, %v428_v9  ;;  %vm438_vm1 = vcmp.gt.f32.partialorder %v623_v8, %v425_v12  ;;  %v491_v18 = vpack.c.b8 %v490_v11, %v490_v11 }
  0x4a   : > { %vm454_vm2 = vcmp.gt.f32.partialorder %v626_v10, %v441_v15  ;;  %v442_v20 = vsel %vm438_vm1, %v623_v8, %v425_v12  ;;  %v446_v21 = vsel %vm438_vm1, 6, %v429_v13 }
  0x4b   : > { %v458_v23 = vsel %vm454_vm2, %v626_v10, %v441_v15  ;;  %v462_v24 = vsel %vm454_vm2, 7, %v445_v16  ;;  %vm455_vm4 = vcmp.gt.f32.partialorder %v627_v14, %v442_v20  ;;  %vm495_vm5 = vnez %v491_v18 }
  0x4c   : > { %vm471_vm6 = vcmp.gt.f32.partialorder %v630_v17, %v458_v23  ;;  %v459_v25 = vsel %vm455_vm4, %v627_v14, %v442_v20  ;;  %v463_v26 = vsel %vm455_vm4, 7, %v446_v21  ;;  %v499_v27 = vsel %vm495_vm5, 16843009, %v686_v40 }
  0x4d   : > { %v475_v28 = vsel %vm471_vm6, 8, %v462_v24  ;;  %vm472_vm7 = vcmp.gt.f32.partialorder %v631_v22, %v459_v25  ;;  %v503_v29 = vunpack.c.0.s8 %v499_v27 }
  0x4e   : > { %v510_v30 = vsel %vm896_vm3, %v475_v28, 0  ;;  %v476_v31 = vsel %vm472_vm7, 8, %v463_v26 }
  0x4f   : > { %514 = vst [vmem:[%s868_s9 + $0x10] sm:$0xff] %v510_v30  ;;  %vm507_vm8 = vcmp.ne.s32.totalorder %v503_v29, 0 }
  0x50   : > { %v511_v32 = vsel %vm507_vm8, %v476_v31, 0 }
  0x51   : > { %515 = vst [vmem:[%s868_s9 + $0x18] sm:$0xff] %v511_v32 }
  0x52 PF: > { %p9_p10 = scmp.ge.s32.totalorder %s721_s13, 6   ;;  %s922_s9 = smov %s680_s10 }
  0x53   : > { %s923_s10 = smov %s730_s16  ;;  %s924_s11 = smov %s721_s13 }
  0x54   :  { %11 = sbr.rel (!%p9_p10) target bundleno = 2 (0x2), region = 112 }

</bundles_post_ra>
